<compile_context>
chip_gen: v6e
topology: v6e:2x2x1
jax: 0.10.0
libtpu: 0.0.40
codegen_flags: <defaults>
</compile_context>

<pallas_src>
import functools
import math

import jax
import jax.numpy as jnp
import numpy as np
from jax import lax
from jax.experimental import pallas as pl
from jax.experimental.pallas import tpu as pltpu


VGG_CFG = {
    "VGG11": [64, "M", 128, "M", 256, 256, "M", 512, 512, "M", 512, 512, "M"],
    "VGG13": [64, 64, "M", 128, 128, "M", 256, 256, "M", 512, 512, "M",
              512, 512, "M"],
    "VGG16": [64, 64, "M", 128, 128, "M", 256, 256, 256, "M", 512, 512, 512,
              "M", 512, 512, 512, "M"],
    "VGG19": [64, 64, "M", 128, 128, "M", 256, 256, 256, 256, "M",
              512, 512, 512, 512, "M", 512, 512, 512, 512, "M"],
}

GABOR_KSIZE = 31            # Gabor kernel size (square)
GABOR_PAD = 15              # 'same' padding
OPP_CIN = 5                 # opponency channels feeding the Gabor conv
GABOR_OUT = 64              # Gabor output channels
KY_GROUP = 4                # Toeplitz kernel rows folded into one grid step
ACT_DTYPE = jnp.bfloat16    # activation / weight dtype (f32 accumulation)
VMEM_LIMIT_BYTES = 40 * 1024 * 1024   # explicit scoped-VMEM limit (v7x headroom)


# ----------------------------- Pallas kernels ------------------------------ #

def _opponency_pad_kernel(x_ref, o_ref):
    """RGB -> 5 opponency channels, fused with the padded channel-planar layout.

    x_ref: (1, 3, H, W)            f32 (NCHW tile)
    o_ref: (1, HP, OPP_CIN * WP)   bf16;  o[0, PAD+h, c*WP + PAD + w] = chan_c[h, w]
    """
    H = x_ref.shape[2]
    W = x_ref.shape[3]
    WP = o_ref.shape[2] // OPP_CIN

    o_ref[...] = jnp.zeros_like(o_ref)          # zero padding border
    r = x_ref[0, 0]
    g = x_ref[0, 1]
    b = x_ref[0, 2]
    i = (r + g + b) / 3.0
    rr = jnp.maximum(r - (g + b) / 2.0, 0.0)
    gg = jnp.maximum(g - (r - b) / 2.0, 0.0)
    bb = jnp.maximum(b - (r + g) / 2.0, 0.0)
    yy = jnp.maximum((r + g) / 2.0 - (r - g) / 2.0 - b, 0.0)
    chans = (i,
             jnp.maximum(rr - gg, 0.0),
             jnp.maximum(gg - rr, 0.0),
             jnp.maximum(bb - yy, 0.0),
             jnp.maximum(yy - bb, 0.0))
    for c, ch in enumerate(chans):
        lo = c * WP + GABOR_PAD
        o_ref[0, GABOR_PAD:GABOR_PAD + H, lo:lo + W] = ch.astype(o_ref.dtype)


def _gabor_toeplitz_kernel(xp_ref, wt_ref, o_ref, acc_ref):
    """31x31 Gabor conv as Toeplitz matmuls; grid = (batch, ky group).

    xp_ref : (1, HP, CIN*WP)            bf16 padded channel-planar image
    wt_ref : (KY_GROUP, CIN*WP, W*Cout) bf16 Toeplitz weight rows of this group
    o_ref  : (1, H, W*Cout)             bf16
    acc_ref: (H, W*Cout)                f32 accumulator
    """
    kg = pl.program_id(1)
    ky_grp = wt_ref.shape[0]
    H = o_ref.shape[1]

    @pl.when(kg == 0)
    def _():
        acc_ref[...] = jnp.zeros_like(acc_ref)

    for j in range(ky_grp):
        rows = xp_ref[0, pl.ds(kg * ky_grp + j, H), :]        # (H, CIN*WP)
        acc_ref[...] += jnp.dot(rows, wt_ref[j],
                                preferred_element_type=jnp.float32)

    @pl.when(kg == pl.num_programs(1) - 1)
    def _():
        o_ref[0] = acc_ref[...].astype(o_ref.dtype)


def _conv3x3_bn_relu_kernel(x_ref, w_ref, b_ref, o_ref, xp_ref, patch_ref, *,
                            pool):
    """3x3 conv (pad 1) + folded BN + ReLU (+ fused 2x2 maxpool) per batch block.

    x_ref    : (Bb, H, W, Cin)          bf16
    w_ref    : (9*Cin, Cout)            bf16 (BN-folded, full Cout tile)
    b_ref    : (1, Cout)                f32  (folded BN bias)
    o_ref    : (Bb, Ho, Wo, Cout)       bf16 (Ho=H//2 if pool else H)
    xp_ref   : (Bb, H+2, W+2, Cin)      bf16 VMEM scratch (padded tile)
    patch_ref: (Bb*H*W, 9*Cin)          bf16 VMEM scratch (im2col matrix)
    """
    Bb, H, W, Cin = x_ref.shape
    Cout = o_ref.shape[3]
    HW = H * W

    # Zero-pad in VMEM.  The whole scratch is memset every step (not only on
    # step 0) so the borders stay valid even when the "parallel" batch axis is
    # sharded across TensorCores (each core has its own scratch copy).
    xp_ref[...] = jnp.zeros_like(xp_ref)
    xp_ref[:, 1:H + 1, 1:W + 1, :] = x_ref[...]

    # im2col: built ONCE per image per layer (single Cout tile), in bf16.
    t = 0
    for dy in range(3):
        for dx in range(3):
            for bi in range(Bb):
                patch_ref[bi * HW:(bi + 1) * HW, t * Cin:(t + 1) * Cin] = (
                    xp_ref[bi, dy:dy + H, dx:dx + W, :].reshape(HW, Cin))
            t += 1

    y = jnp.dot(patch_ref[...], w_ref[...], preferred_element_type=jnp.float32)
    y = jnp.maximum(y + b_ref[...], 0.0)                      # (Bb*H*W, Cout)

    if pool:
        y = y.reshape(Bb, H, W // 2, 2, Cout)
        y = jnp.maximum(y[:, :, :, 0, :], y[:, :, :, 1, :])   # max over w pairs
        y = y.reshape(Bb, H // 2, 2, W // 2, Cout)
        y = jnp.maximum(y[:, :, 0, :, :], y[:, :, 1, :, :])   # max over h pairs
        o_ref[...] = y.astype(o_ref.dtype)
    else:
        o_ref[...] = y.reshape(Bb, H, W, Cout).astype(o_ref.dtype)


# ------------------------------ kernel wrappers ----------------------------- #

def opponency_encode_pad(x_nchw, kh_pad):
    B, C, H, W = x_nchw.shape
    assert C == 3
    HP = H + kh_pad - 1
    WP = W + GABOR_KSIZE - 1
    return pl.pallas_call(
        _opponency_pad_kernel,
        out_shape=jax.ShapeDtypeStruct((B, HP, OPP_CIN * WP), ACT_DTYPE),
        grid=(B,),
        in_specs=[pl.BlockSpec((1, 3, H, W), lambda b: (b, 0, 0, 0))],
        out_specs=pl.BlockSpec((1, HP, OPP_CIN * WP), lambda b: (b, 0, 0)),
        compiler_params=pltpu.CompilerParams(
            dimension_semantics=("parallel",)),
    )(x_nchw.astype(jnp.float32))


def gabor_conv(xp_flat, wt, H, W, cout):
    """'Same' 31x31 conv as Toeplitz matmuls over ky groups."""
    B, HP, CINWP = xp_flat.shape
    kh_pad = wt.shape[0]
    n_grp = kh_pad // KY_GROUP
    return pl.pallas_call(
        _gabor_toeplitz_kernel,
        out_shape=jax.ShapeDtypeStruct((B, H, W * cout), ACT_DTYPE),
        grid=(B, n_grp),
        in_specs=[
            pl.BlockSpec((1, HP, CINWP), lambda b, k: (b, 0, 0)),
            pl.BlockSpec((KY_GROUP, CINWP, W * cout), lambda b, k: (k, 0, 0)),
        ],
        out_specs=pl.BlockSpec((1, H, W * cout), lambda b, k: (b, 0, 0)),
        scratch_shapes=[pltpu.VMEM((H, W * cout), jnp.float32)],
        compiler_params=pltpu.CompilerParams(
            dimension_semantics=("parallel", "arbitrary"),
            vmem_limit_bytes=VMEM_LIMIT_BYTES),
    )(xp_flat, wt)


def conv3x3_bn_relu(x_nhwc, w_mat, bias_row, cout, *, pool):
    B, H, W, Cin = x_nhwc.shape
    Bb = B if H * W <= 64 else 1        # fuse batch into M for the deep layers
    Ho, Wo = (H // 2, W // 2) if pool else (H, W)
    kernel = functools.partial(_conv3x3_bn_relu_kernel, pool=pool)
    return pl.pallas_call(
        kernel,
        out_shape=jax.ShapeDtypeStruct((B, Ho, Wo, cout), ACT_DTYPE),
        grid=(B // Bb,),
        in_specs=[
            pl.BlockSpec((Bb, H, W, Cin), lambda i: (i, 0, 0, 0)),
            pl.BlockSpec((9 * Cin, cout), lambda i: (0, 0)),   # resident weights
            pl.BlockSpec((1, cout), lambda i: (0, 0)),
        ],
        out_specs=pl.BlockSpec((Bb, Ho, Wo, cout), lambda i: (i, 0, 0, 0)),
        scratch_shapes=[
            pltpu.VMEM((Bb, H + 2, W + 2, Cin), ACT_DTYPE),
            pltpu.VMEM((Bb * H * W, 9 * Cin), ACT_DTYPE),
        ],
        compiler_params=pltpu.CompilerParams(
            dimension_semantics=("parallel",),
            vmem_limit_bytes=VMEM_LIMIT_BYTES),
    )(x_nhwc.astype(ACT_DTYPE), w_mat.astype(ACT_DTYPE), bias_row)


def maxpool2x2(x_nhwc):
    # Fallback only for an 'M' that does not follow a conv (never happens in
    # the standard VGG configs -- the pool is fused into the conv epilogue).
    B, H, W, C = x_nhwc.shape
    x = x_nhwc.reshape(B, H // 2, 2, W // 2, 2, C)
    return jnp.max(jnp.max(x, axis=4), axis=2)


# ------------------------------ parameters --------------------------------- #

def _bn_params(c, idx):
    """Deterministic, non-trivial BN params / running stats (eval mode)."""
    i = jnp.arange(c, dtype=jnp.float32)
    k = float(idx + 1)
    return dict(gamma=1.0 + 0.05 * k * i / c,
                beta=0.02 * k * i / c,
                mean=0.01 * k * i / c,
                var=1.0 + 0.03 * k * i / c)


def init_gabor_params(key, in_channels, out_channels, kernel_size=(31, 31)):
    kh, kw = kernel_size
    k1, k2, k3 = jax.random.split(key, 3)
    freq_pow = jax.random.randint(k1, (out_channels, in_channels), 0, 5)
    freq = (math.pi / 2.0) * jnp.sqrt(2.0) ** (-freq_pow.astype(jnp.float32))
    theta = (math.pi / 8.0) * jax.random.randint(
        k2, (out_channels, in_channels), 0, 8).astype(jnp.float32)
    sigma = math.pi / freq
    psi = math.pi * jax.random.uniform(k3, (out_channels, in_channels),
                                       jnp.float32)
    x0 = math.ceil(kh / 2)
    y0 = math.ceil(kw / 2)
    ygrid, xgrid = jnp.meshgrid(jnp.linspace(-x0 + 1.0, float(x0), kh),
                                jnp.linspace(-y0 + 1.0, float(y0), kw),
                                indexing="ij")
    return dict(freq=freq, theta=theta, sigma=sigma, psi=psi,
                x=xgrid.astype(jnp.float32), y=ygrid.astype(jnp.float32),
                delta=1e-3)


def gabor_weights(p):
    """Vectorised port of GaborConv2d.calculate_weights() -> (O, I, KH, KW)."""
    x = p["x"][None, None]
    y = p["y"][None, None]
    freq = p["freq"][:, :, None, None]
    theta = p["theta"][:, :, None, None]
    sigma = p["sigma"][:, :, None, None]
    psi = p["psi"][:, :, None, None]
    rotx = x * jnp.cos(theta) + y * jnp.sin(theta)
    roty = -x * jnp.sin(theta) + y * jnp.cos(theta)
    g = jnp.exp(-0.5 * ((rotx ** 2 + roty ** 2) / (sigma + p["delta"]) ** 2))
    g = g * jnp.cos(freq * rotx + psi)
    g = g / (2.0 * math.pi * sigma ** 2)
    return g


def build_gabor_toeplitz(g_oihw, H, W):
    """Zero-padded Toeplitz weight for the 'same' Gabor conv (host-side prep).

    WT[ky, c*Wp + w + kx, w*Cout + o] = g[o, c, ky, kx]; zeros elsewhere.
    Trailing (KH_pad - KH) kernel rows are zero so the ky reduction tiles
    evenly into KY_GROUP-row grid steps.
    """
    g = np.asarray(g_oihw, dtype=np.float32)
    Cout, Cin, KH, KW = g.shape
    Wp = W + KW - 1
    kh_pad = ((KH + KY_GROUP - 1) // KY_GROUP) * KY_GROUP
    wt = np.zeros((kh_pad, Cin * Wp, W * Cout), np.float32)
    a = np.transpose(g, (2, 1, 3, 0))                       # (KH, Cin, KW, Cout)
    for w in range(W):
        for c in range(Cin):
            wt[:KH, c * Wp + w: c * Wp + w + KW,
               w * Cout:(w + 1) * Cout] = a[:, c]
    return jnp.asarray(wt, dtype=ACT_DTYPE)


def init_vgg_feature_params(key, cfg, in_channels):
    layers = []
    c_in = in_channels
    for li, v in enumerate(cfg):
        if v == "M":
            layers.append("M")
            continue
        key, sub = jax.random.split(key)
        fan_in, fan_out = c_in * 9, v * 9
        std = math.sqrt(2.0 / (fan_in + fan_out))           # xavier_normal_
        w = std * jax.random.normal(sub, (v, c_in, 3, 3), jnp.float32)
        layers.append(dict(w=w, b=jnp.zeros((v,), jnp.float32),
                           bn=_bn_params(v, li)))
        c_in = v
    return layers


def _fold_conv_bn(w_oihw, conv_bias, bn, eps=1e-5):
    """Fold eval-mode BN into the conv: returns ((9*Cin, Cout), (1, Cout))."""
    scale = bn["gamma"] / jnp.sqrt(bn["var"] + eps)                  # (O,)
    bias = bn["beta"] + (conv_bias - bn["mean"]) * scale             # (O,)
    w_f = w_oihw * scale[:, None, None, None]
    o, i = w_oihw.shape[0], w_oihw.shape[1]
    w_mat = jnp.transpose(w_f, (2, 3, 1, 0)).reshape(9 * i, o)
    return w_mat, bias.reshape(1, o).astype(jnp.float32)


# ------------------------------ forward pass -------------------------------- #

def vgg_forward(x_nchw, gabor_wt, feature_params):
    B, _, H, W = x_nchw.shape
    xp = opponency_encode_pad(x_nchw, kh_pad=gabor_wt.shape[0])
    x = gabor_conv(xp, gabor_wt, H, W, GABOR_OUT).reshape(B, H, W, GABOR_OUT)
    layers = feature_params
    i, n = 0, len(layers)
    while i < n:
        layer = layers[i]
        if isinstance(layer, str):                           # standalone "M"
            x = maxpool2x2(x)
            i += 1
            continue
        pool = (i + 1 < n) and isinstance(layers[i + 1], str)
        w_mat, bias = _fold_conv_bn(layer["w"], layer["b"], layer["bn"])
        x = conv3x3_bn_relu(x, w_mat, bias, layer["w"].shape[0], pool=pool)
        i += 2 if pool else 1
    x = jnp.transpose(x, (0, 3, 1, 2)).astype(jnp.float32)   # NCHW like torch
    return x.reshape(x.shape[0], -1)                         # out.view(B, -1)


# ---------------------------- pure-JAX reference ---------------------------- #

def reference_forward(x_nchw, gabor_params, feature_params, eps=1e-5):
    r, g, b = x_nchw[:, 0], x_nchw[:, 1], x_nchw[:, 2]
    i = (r + g + b) / 3.0
    rr = jnp.maximum(r - (g + b) / 2.0, 0.0)
    gg = jnp.maximum(g - (r - b) / 2.0, 0.0)
    bb = jnp.maximum(b - (r + g) / 2.0, 0.0)
    yy = jnp.maximum((r + g) / 2.0 - (r - g) / 2.0 - b, 0.0)
    x = jnp.stack([i,
                   jnp.maximum(rr - gg, 0.0),
                   jnp.maximum(gg - rr, 0.0),
                   jnp.maximum(bb - yy, 0.0),
                   jnp.maximum(yy - bb, 0.0)], axis=1)

    def conv(x, w, pad):
        return lax.conv_general_dilated(
            x, w, (1, 1), [(pad, pad), (pad, pad)],
            dimension_numbers=("NCHW", "OIHW", "NCHW"))

    x = conv(x, gabor_weights(gabor_params), GABOR_PAD)
    for layer in feature_params:
        if isinstance(layer, str):
            x = lax.reduce_window(x, -jnp.inf, lax.max,
                                  (1, 1, 2, 2), (1, 1, 2, 2), "VALID")
        else:
            bn = layer["bn"]
            c = lambda a: a[None, :, None, None]
            x = conv(x, layer["w"], 1) + c(layer["b"])
            x = (x - c(bn["mean"])) / jnp.sqrt(c(bn["var"]) + eps) \
                * c(bn["gamma"]) + c(bn["beta"])
            x = jax.nn.relu(x)
    return x.reshape(x.shape[0], -1)


# ---------------------------------- main ------------------------------------ #

if __name__ == "__main__":
    key = jax.random.PRNGKey(0)
    k_x, k_g, k_f = jax.random.split(key, 3)

    B, H, W = 2, 32, 32          # smallest spatial size the 5 maxpools allow
    vgg_name = "VGG11"

    x = jax.random.normal(k_x, (B, 3, H, W), jnp.float32)
    gabor_params = init_gabor_params(k_g, in_channels=OPP_CIN,
                                     out_channels=GABOR_OUT)
    feature_params = init_vgg_feature_params(k_f, VGG_CFG[vgg_name], GABOR_OUT)

    # Parameter prep (not data-path work): Gabor weights -> Toeplitz matrix.
    gabor_wt = build_gabor_toeplitz(gabor_weights(gabor_params), H, W)

    out = jax.block_until_ready(vgg_forward(x, gabor_wt, feature_params))
    ref = jax.block_until_ready(
        reference_forward(x, gabor_params, feature_params))

    assert out.shape == (B, 512), out.shape
    assert bool(jnp.all(jnp.isfinite(out)))
    np.testing.assert_allclose(np.asarray(out, np.float32), np.asarray(ref),
                               rtol=1e-1, atol=5e-2)
    print("KERNEL_OK")
</pallas_src>

<mosaic_0001>
module attributes {stable_mosaic.version = 11 : i64} {
  func.func @_opponency_pad_kernel(%arg0: i32, %arg1: memref<1x3x32x32xf32, #tpu.memory_space<vmem>>, %arg2: memref<1x63x310xbf16, #tpu.memory_space<vmem>>) attributes {dimension_semantics = [#tpu.dimension_semantics<parallel>], iteration_bounds = array<i64: 2>, scalar_prefetch = 0 : i64, scratch_operands = 0 : i64, tpu.core_type = #tpu.core_type<tc>, window_params = [{transform_indices = @transform_0, window_bounds = array<i64: 1, 3, 32, 32>}, {transform_indices = @transform_1, window_bounds = array<i64: 1, 63, 310>}]} {
    %cst = arith.constant 0.000000e+00 : bf16
    %0 = vector.broadcast %cst : bf16 to vector<1x63x310xbf16>
    %c0 = arith.constant 0 : index
    %c0_0 = arith.constant 0 : index
    %c0_1 = arith.constant 0 : index
    %1 = vector.load %arg2[%c0, %c0_0, %c0_1] : memref<1x63x310xbf16, #tpu.memory_space<vmem>>, vector<1x63x310xbf16>
    tpu.vector_store %arg2[%c0, %c0_0, %c0_1], %0 {strides = array<i32>} : memref<1x63x310xbf16, #tpu.memory_space<vmem>>, vector<1x63x310xbf16>,
    %c0_2 = arith.constant 0 : index
    %c0_3 = arith.constant 0 : index
    %c0_4 = arith.constant 0 : index
    %c0_5 = arith.constant 0 : index
    %2 = vector.load %arg1[%c0_2, %c0_3, %c0_4, %c0_5] : memref<1x3x32x32xf32, #tpu.memory_space<vmem>>, vector<1x1x32x32xf32>
    %3 = vector.shape_cast %2 : vector<1x1x32x32xf32> to vector<32x32xf32>
    %c0_6 = arith.constant 0 : index
    %c1 = arith.constant 1 : index
    %c0_7 = arith.constant 0 : index
    %c0_8 = arith.constant 0 : index
    %4 = vector.load %arg1[%c0_6, %c1, %c0_7, %c0_8] : memref<1x3x32x32xf32, #tpu.memory_space<vmem>>, vector<1x1x32x32xf32>
    %5 = vector.shape_cast %4 : vector<1x1x32x32xf32> to vector<32x32xf32>
    %c0_9 = arith.constant 0 : index
    %c2 = arith.constant 2 : index
    %c0_10 = arith.constant 0 : index
    %c0_11 = arith.constant 0 : index
    %6 = vector.load %arg1[%c0_9, %c2, %c0_10, %c0_11] : memref<1x3x32x32xf32, #tpu.memory_space<vmem>>, vector<1x1x32x32xf32>
    %7 = vector.shape_cast %6 : vector<1x1x32x32xf32> to vector<32x32xf32>
    %8 = arith.addf %3, %5 : vector<32x32xf32>
    %9 = arith.addf %8, %7 : vector<32x32xf32>
    %cst_12 = arith.constant 3.000000e+00 : f32
    %10 = vector.broadcast %cst_12 : f32 to vector<32x32xf32>
    %11 = arith.divf %9, %10 : vector<32x32xf32>
    %12 = arith.addf %5, %7 : vector<32x32xf32>
    %cst_13 = arith.constant 2.000000e+00 : f32
    %13 = vector.broadcast %cst_13 : f32 to vector<32x32xf32>
    %14 = arith.divf %12, %13 : vector<32x32xf32>
    %15 = arith.subf %3, %14 : vector<32x32xf32>
    %cst_14 = arith.constant 0.000000e+00 : f32
    %16 = vector.broadcast %cst_14 : f32 to vector<32x32xf32>
    %17 = arith.maximumf %15, %16 : vector<32x32xf32>
    %18 = arith.subf %3, %7 : vector<32x32xf32>
    %cst_15 = arith.constant 2.000000e+00 : f32
    %19 = vector.broadcast %cst_15 : f32 to vector<32x32xf32>
    %20 = arith.divf %18, %19 : vector<32x32xf32>
    %21 = arith.subf %5, %20 : vector<32x32xf32>
    %cst_16 = arith.constant 0.000000e+00 : f32
    %22 = vector.broadcast %cst_16 : f32 to vector<32x32xf32>
    %23 = arith.maximumf %21, %22 : vector<32x32xf32>
    %24 = arith.addf %3, %5 : vector<32x32xf32>
    %cst_17 = arith.constant 2.000000e+00 : f32
    %25 = vector.broadcast %cst_17 : f32 to vector<32x32xf32>
    %26 = arith.divf %24, %25 : vector<32x32xf32>
    %27 = arith.subf %7, %26 : vector<32x32xf32>
    %cst_18 = arith.constant 0.000000e+00 : f32
    %28 = vector.broadcast %cst_18 : f32 to vector<32x32xf32>
    %29 = arith.maximumf %27, %28 : vector<32x32xf32>
    %30 = arith.addf %3, %5 : vector<32x32xf32>
    %cst_19 = arith.constant 2.000000e+00 : f32
    %31 = vector.broadcast %cst_19 : f32 to vector<32x32xf32>
    %32 = arith.divf %30, %31 : vector<32x32xf32>
    %33 = arith.subf %3, %5 : vector<32x32xf32>
    %cst_20 = arith.constant 2.000000e+00 : f32
    %34 = vector.broadcast %cst_20 : f32 to vector<32x32xf32>
    %35 = arith.divf %33, %34 : vector<32x32xf32>
    %36 = arith.subf %32, %35 : vector<32x32xf32>
    %37 = arith.subf %36, %7 : vector<32x32xf32>
    %cst_21 = arith.constant 0.000000e+00 : f32
    %38 = vector.broadcast %cst_21 : f32 to vector<32x32xf32>
    %39 = arith.maximumf %37, %38 : vector<32x32xf32>
    %40 = arith.subf %17, %23 : vector<32x32xf32>
    %cst_22 = arith.constant 0.000000e+00 : f32
    %41 = vector.broadcast %cst_22 : f32 to vector<32x32xf32>
    %42 = arith.maximumf %40, %41 : vector<32x32xf32>
    %43 = arith.subf %23, %17 : vector<32x32xf32>
    %cst_23 = arith.constant 0.000000e+00 : f32
    %44 = vector.broadcast %cst_23 : f32 to vector<32x32xf32>
    %45 = arith.maximumf %43, %44 : vector<32x32xf32>
    %46 = arith.subf %29, %39 : vector<32x32xf32>
    %cst_24 = arith.constant 0.000000e+00 : f32
    %47 = vector.broadcast %cst_24 : f32 to vector<32x32xf32>
    %48 = arith.maximumf %46, %47 : vector<32x32xf32>
    %49 = arith.subf %39, %29 : vector<32x32xf32>
    %cst_25 = arith.constant 0.000000e+00 : f32
    %50 = vector.broadcast %cst_25 : f32 to vector<32x32xf32>
    %51 = arith.maximumf %49, %50 : vector<32x32xf32>
    %52 = arith.truncf %11 : vector<32x32xf32> to vector<32x32xbf16>
    %c0_26 = arith.constant 0 : index
    %c15 = arith.constant 15 : index
    %c15_27 = arith.constant 15 : index
    %53 = vector.load %arg2[%c0_26, %c15, %c15_27] : memref<1x63x310xbf16, #tpu.memory_space<vmem>>, vector<1x32x32xbf16>
    %54 = vector.shape_cast %53 : vector<1x32x32xbf16> to vector<32x32xbf16>
    %55 = vector.shape_cast %52 : vector<32x32xbf16> to vector<1x32x32xbf16>
    tpu.vector_store %arg2[%c0_26, %c15, %c15_27], %55 {strides = array<i32>} : memref<1x63x310xbf16, #tpu.memory_space<vmem>>, vector<1x32x32xbf16>,
    %56 = arith.truncf %42 : vector<32x32xf32> to vector<32x32xbf16>
    %c0_28 = arith.constant 0 : index
    %c15_29 = arith.constant 15 : index
    %c77 = arith.constant 77 : index
    %57 = vector.load %arg2[%c0_28, %c15_29, %c77] : memref<1x63x310xbf16, #tpu.memory_space<vmem>>, vector<1x32x32xbf16>
    %58 = vector.shape_cast %57 : vector<1x32x32xbf16> to vector<32x32xbf16>
    %59 = vector.shape_cast %56 : vector<32x32xbf16> to vector<1x32x32xbf16>
    tpu.vector_store %arg2[%c0_28, %c15_29, %c77], %59 {strides = array<i32>} : memref<1x63x310xbf16, #tpu.memory_space<vmem>>, vector<1x32x32xbf16>,
    %60 = arith.truncf %45 : vector<32x32xf32> to vector<32x32xbf16>
    %c0_30 = arith.constant 0 : index
    %c15_31 = arith.constant 15 : index
    %c139 = arith.constant 139 : index
    %61 = vector.load %arg2[%c0_30, %c15_31, %c139] : memref<1x63x310xbf16, #tpu.memory_space<vmem>>, vector<1x32x32xbf16>
    %62 = vector.shape_cast %61 : vector<1x32x32xbf16> to vector<32x32xbf16>
    %63 = vector.shape_cast %60 : vector<32x32xbf16> to vector<1x32x32xbf16>
    tpu.vector_store %arg2[%c0_30, %c15_31, %c139], %63 {strides = array<i32>} : memref<1x63x310xbf16, #tpu.memory_space<vmem>>, vector<1x32x32xbf16>,
    %64 = arith.truncf %48 : vector<32x32xf32> to vector<32x32xbf16>
    %c0_32 = arith.constant 0 : index
    %c15_33 = arith.constant 15 : index
    %c201 = arith.constant 201 : index
    %65 = vector.load %arg2[%c0_32, %c15_33, %c201] : memref<1x63x310xbf16, #tpu.memory_space<vmem>>, vector<1x32x32xbf16>
    %66 = vector.shape_cast %65 : vector<1x32x32xbf16> to vector<32x32xbf16>
    %67 = vector.shape_cast %64 : vector<32x32xbf16> to vector<1x32x32xbf16>
    tpu.vector_store %arg2[%c0_32, %c15_33, %c201], %67 {strides = array<i32>} : memref<1x63x310xbf16, #tpu.memory_space<vmem>>, vector<1x32x32xbf16>,
    %68 = arith.truncf %51 : vector<32x32xf32> to vector<32x32xbf16>
    %c0_34 = arith.constant 0 : index
    %c15_35 = arith.constant 15 : index
    %c263 = arith.constant 263 : index
    %69 = vector.load %arg2[%c0_34, %c15_35, %c263] : memref<1x63x310xbf16, #tpu.memory_space<vmem>>, vector<1x32x32xbf16>
    %70 = vector.shape_cast %69 : vector<1x32x32xbf16> to vector<32x32xbf16>
    %71 = vector.shape_cast %68 : vector<32x32xbf16> to vector<1x32x32xbf16>
    tpu.vector_store %arg2[%c0_34, %c15_35, %c263], %71 {strides = array<i32>} : memref<1x63x310xbf16, #tpu.memory_space<vmem>>, vector<1x32x32xbf16>,
    return
  }
  func.func @transform_0(%arg0: i32) -> (i32, i32, i32, i32) {
    %c0_i32 = arith.constant 0 : i32
    %c0_i32_0 = arith.constant 0 : i32
    %c0_i32_1 = arith.constant 0 : i32
    %c0_i32_2 = arith.constant 0 : i32
    return %arg0, %c0_i32, %c0_i32_0, %c0_i32_1 : i32, i32, i32, i32
  }
  func.func @transform_1(%arg0: i32) -> (i32, i32, i32) {
    %c0_i32 = arith.constant 0 : i32
    %c0_i32_0 = arith.constant 0 : i32
    %c0_i32_1 = arith.constant 0 : i32
    return %arg0, %c0_i32, %c0_i32_0 : i32, i32, i32
  }
}

</mosaic_0001>

<bundles_post_ra>
// kernel: tpu_custom_call.1
= control target key start
LH: loop header
LB: loop body
LE: loop exit
PB: predicated region body
PF: predicated region fallthrough
CT: control target
= control target key end

     0   :  { %6 = vsyncpa [#allocation3], 0  ;;  %s1383_s0 = inlined_call_operand.hbm [shape: f32[2,3,32,32], index: 0, kind: input, shape index: {}]   ;;  %s1384_s1 = inlined_call_operand.vmem [shape: bf16[2,63,310], index: 1, kind: output, shape index: {}]  }
   0x1   :  { %8 = vsyncpa [#allocation3 + $0x1], 0  ;;  %s952_s6 = smov 0   ;;  %s954_s7 = smov 0  }
   0x2   :  { %s956_s8 = smov 0   ;;  %s958_s9 = smov 0  }
   0x3 LB: > { %s971_s10 = sadd.s32 4294967295, %s931_s9   ;;  %s974_s11 = sadd.s32 1, %s931_s9   ;;  %s931_s9 = sphi %s958_s9, %s1399_s9   ;;  %s927_s8 = sphi %s956_s8, %s1398_s8   ;;  %s923_s7 = sphi %s954_s7, %s1397_s7   ;;  %s919_s6 = sphi %s952_s6, %s1396_s6  }
   0x4   : > { %s18_s12 = ssub.s32 %s931_s9, %s974_s11  ;;  %s21_s13 = sadd.s32 1, %s927_s8 }
   0x5   : > { %p19_p0 = scmp.eq.s32.totalorder %s18_s12, 0  ;;  %p28_p1 = scmp.ne.s32.totalorder %s927_s8, %s923_s7 }
   0x6   : > { %p29_p2 = scmp.eq.s32.totalorder %s931_s9, 0  ;;  %p34_p3 = scmp.ne.s32.totalorder %s923_s7, %s919_s6 }
   0x7   : > { %s984_s14 = scalar_select %p19_p0, %s927_s8, %s21_s13  }
   0x8   : > { %p30_p4 = por %p29_p2, %p28_p1  ;;  %p35_p5 = scmp.eq.s32.totalorder %s971_s10, 0 }
   0x9   : > { %p828_p6 = scmp.lt.s32.totalorder %s931_s9, 2  ;;  %s84_s16 = sand.u32 1, %s927_s8  }
   0xa   : > { %p988_p7 = por %p35_p5, %p34_p3  ;;  %s818_s17 = smul.u32 96, %s84_s16 }
   0xb   : > { %s819_s18 = smul.u32 1536, %s931_s9  ;;  %p994_p8 = pnand %p828_p6, %p30_p4 }
   0xc   : > { %s1386_s15 = scalar_select %p988_p7, 1, 0 }
   0xd   : > { %s1001_s22 = scalar_lea.hbm %s1383_s0, %s819_s18  ;;  %s88_s23 = scalar_lea.vmem [#allocation2], %s818_s17 }
   0xe   : > { %s95_s24 = sshll.u32 %s88_s23, 4  ;;  %s1006_s25 = scalar_lea.sflag [#allocation3], %s84_s16  ;;  %s1003_s24 = int_to_ptr.vmem [resolvable:$true] %s95_s24 }
   0xf   : > { %s869_s26 = scalar_lea.hbm %s1001_s22, 1536  ;;  %p871_p11 = pneg %p994_p8 }
  0x10   : > { %p870_p10 = scmp.ne.s32.totalorder %s1001_s22, %s869_s26  ;;  %s874_s29 = scalar_lea.hbm %s1383_s0, 3072 }
  0x11   : > { %p875_p0 = scmp.lt.s32.totalorder %s1001_s22, %s1383_s0  ;;  %p876_p1 = scmp.lt.s32.totalorder %s874_s29, %s869_s26 }
  0x12   : > { %p872_p12 = pnand %p871_p11, %p870_p10 }
  0x13   : > { %p877_p2 = por %p876_p1, %p875_p0 }
  0x14   : > { %p873_p13 = pneg %p872_p12 }
  0x16   : > { %p878_p3 = pnand %p877_p2, %p873_p13 }
  0x18   : > { %881 = shalt.err (!%p878_p3)
}
  0x19   : > { %s882_s3 = scalar_lea.vmem %s1003_s24, 1536  ;;  %s933_s4 = smov [#allocation2]  }
  0x1a   : > { %p883_p4 = scmp.ne.s32.totalorder %s1003_s24, %s882_s3  ;;  %s887_s5 = sshll.u32 %s933_s4, 4  ;;  %s888_s5 = int_to_ptr.vmem [resolvable:$false] %s887_s5 }
  0x1b   : > { %s889_s6 = scalar_lea.vmem %s888_s5, 3072  ;;  %p890_p10 = scmp.lt.s32.totalorder %s1003_s24, %s888_s5 }
  0x1c   : > { %p885_p5 = pnand %p883_p4, %p871_p11  ;;  %p891_p12 = scmp.lt.s32.totalorder %s889_s6, %s882_s3 }
  0x1e   : > { %p886_p6 = pneg %p885_p5  ;;  %p892_p9 = por %p891_p12, %p890_p10 }
  0x20   : > { %p893_p7 = pnand %p892_p9, %p886_p6 }
  0x22   : > { %896 = shalt.err (!%p893_p7)
}
  0x23   : > { %s934_s12 = smov 128   ;;  %s935_s13 = smov 8  }
  0x24   : > { %827 = dma.hbm_to_vmem [thread:$0]  (!%p994_p8), %s1001_s22, 1536, %s1003_s24, %s1006_s25, %s934_s12, %s934_s12, %s935_s13  }
  0x25   : > { %p103_p11 = scmp.lt.s32.totalorder %s931_s9, 3  ;;  %p1388_p13 = scmp.ge.s32.totalorder %s931_s9, 1 }
  0x27   : > { %p104_p0 = pnand %p1388_p13, %p103_p11 }
  0x28   : > { %s109_s16 = sand.u32 (!%p104_p0), 1, %s923_s7   ;;  %p1389_p7 = scmp.ne.s32.totalorder (!%p104_p0), %s1386_s15, 0 }
  0x29   : > { %107 = sbr.rel (%p104_p0) target bundleno = 244 (0xf4), region = 24  ;;  %s110_s18 = scalar_lea.sflag (!%p104_p0), [#allocation3], %s109_s16 }
  0x2a   : > { %s820_s17 = smul.u32 (!%p104_p0), 96, %s109_s16 }
  0x2c   : > { %s1031_s20 = scalar_lea.vmem (!%p104_p0), [#allocation2], %s820_s17 }
  0x2e   : > { %914 = dma.done.wait (%p1389_p7), %s110_s18, 1536  }
  0x2f   : > { %916 = vsyncadd (%p1389_p7), %s110_s18, 4294965760  ;;  %p132_p8 = scmp.lt.s32.totalorder %s971_s10, 1  ;;  %vm153_vm0 = vcmask 1043456   ;;  %vm154_vm1 = vsmask.f32 3328  ;;  %vm156_vm2 = vcmask 1047556  }
  0x30   : > { %vm157_vm3 = vsmask.f32 7424  ;;  %vm1040_vm4 = vmand %vm153_vm0, %vm154_vm1  ;;  %v168_v2 = vld [vmem:[%s1031_s20] sm:$0xff]  ;;  %v936_v5 = vmov 0   ;;  %v1079_v8 = vld [vmem:[%s1031_s20 + $0x18] sm:$0xff]  ;;  %s938_s22 = smov 11  }
  0x31   : > { %s1401_s10 = smov (!%p132_p8, %s971_s10), 1  ;;  %vm1044_vm5 = vmand %vm156_vm2, %vm157_vm3  ;;  %v1059_v3 = vld [vmem:[%s1031_s20 + $0x20] sm:$0xff]  ;;  %v1082_v9 = vld [vmem:[%s1031_s20 + $0x38] sm:$0xff]  ;;  %vm304_vm7 = vsmask.f32 7440  ;;  %s939_s23 = smov 77  }
  0x32   : > { %s821_s9 = smul.u32 96, %s1401_s10  ;;  %vm159_vm6 = vmor %vm1044_vm5, %vm1040_vm4  ;;  %v772_v4 = vld [vmem:[%s1031_s20 + $0x40] sm:$0xff]  ;;  %v182_v6 = vadd.f32 %v1059_v3, %v168_v2  ;;  %v240_v7 = vsub.f32 %v168_v2, %v1059_v3  ;;  %v1085_v10 = vld [vmem:[%s1031_s20 + $0x58] sm:$0xff]  ;;  %v1090_v12 = vadd.f32 %v1082_v9, %v1079_v8  ;;  %s937_s10 = smov 15   ;;  %vm139_vm9 = vcmask 437248  }
  0x33   : > { %v195_v11 = vadd.f32 %v772_v4, %v1059_v3  ;;  %v1093_v13 = vld [vmem:[%s1031_s20 + $0x8] sm:$0xff]  ;;  %v1096_v14 = vld [vmem:[%s1031_s20 + $0x10] sm:$0xff]  ;;  %v212_v16 = vsub.f32 %v168_v2, %v772_v4  ;;  %v198_v28 = vadd.f32 %v1085_v10, %v1082_v9  ;;  %v215_v36 = vsub.f32 %v1079_v8, %v1085_v10  ;;  %vm1139_vm8 = vmor %vm154_vm1, %vm304_vm7  ;;  %s940_s24 = smov 73   ;;  %s941_s25 = smov 7  }
  0x34   : > { %s1051_s21 = scalar_lea.vmem %s1384_s1, %s821_s9  ;;  %v1099_v15 = vld [vmem:[%s1031_s20 + $0x28] sm:$0xff]  ;;  %v186_v17 = vadd.f32 %v772_v4, %v182_v6  ;;  %v228_v18 = vmul.f32 0.5, %v182_v6  ;;  %v244_v19 = vmul.f32 0.5, %v240_v7  ;;  %v1102_v20 = vld [vmem:[%s1031_s20 + $0x30] sm:$0xff]  ;;  %v189_v24 = vadd.f32 %v1085_v10, %v1090_v12  ;;  %vm164_vm10 = vmand %vm139_vm9, %vm154_vm1 }
  0x35   : > { %138 = vst [vmem:[%s1051_s21] sm:$0xff] %v936_v5  ;;  %141 = vst [vmem:[%s1051_s21 + $0xc] sm:$0xff] %v936_v5  ;;  %v1105_v21 = vld [vmem:[%s1031_s20 + $0x48] sm:$0xff]  ;;  %v1108_v22 = vld [vmem:[%s1031_s20 + $0x50] sm:$0xff]  ;;  %v1112_v23 = vadd.f32 %v1099_v15, %v1093_v13  ;;  %v1118_v25 = vadd.f32 %v1102_v20, %v1096_v14  ;;  %v200_v27 = vmul.f32 0.5, %v195_v11  ;;  %v216_v39 = vmul.f32 0.5, %v212_v16 }
  0x36   : > { %151 = vst [vmem:[%s1051_s21 + $0x48] sm:$0xff] %v936_v5  ;;  %143 = vst [vmem:[%s1051_s21 + $0x18] sm:$0xff] %v936_v5  ;;  %v160_v26 = vld [vmem:[%s1051_s21 + $0x54] sm:$0xff]  ;;  %v191_v29 = vmul.f32 0.33333334, %v186_v17  ;;  %v248_v30 = vsub.f32 %v228_v18, %v244_v19  ;;  %v232_v40 = vsub.f32 %v772_v4, %v228_v18  ;;  %vm360_vm11 = vcmask 380027  }
  0x37   : > { %145 = vst [vmem:[%s1051_s21 + $0x24] sm:$0xff] %v936_v5  ;;  %147 = vst [vmem:[%s1051_s21 + $0x30] sm:$0xff] %v936_v5  ;;  %v187_v31 = vadd.f32 %v1105_v21, %v1112_v23  ;;  %v161_v32 = vsel %vm159_vm6, 0, %v160_v26  ;;  %v194_v33 = vmul.f32 0.33333334, %v189_v24  ;;  %v188_v34 = vadd.f32 %v1108_v22, %v1118_v25 }
  0x38   : > { %149 = vst [vmem:[%s1051_s21 + $0x3c] sm:$0xff] %v936_v5  ;;  %162 = vst [vmem:[%s1051_s21 + $0x54] sm:$0xff] %v161_v32  ;;  %v204_v35 = vsub.f32 %v168_v2, %v200_v27  ;;  %v798_v37 = vpack.c.bf16 %v191_v29, %v191_v29  ;;  %v252_v44 = vsub.f32 %v248_v30, %v772_v4  ;;  %v236_v52 = vmax.f32 %v232_v40, 0.0 }
  0x39   : > { %v192_v38 = vmul.f32 0.33333334, %v187_v31  ;;  %v801_v41 = vpack.c.bf16 %v194_v33, %v194_v33  ;;  %v193_v42 = vmul.f32 0.33333334, %v188_v34  ;;  %v220_v48 = vsub.f32 %v1059_v3, %v216_v39  ;;  %140 = vst.msk [vmem:[%s1051_s21 + $0x8] sm:$0xf] %vm139_vm9, %v936_v5 }
  0x3a   : > { %v208_v43 = vmax.f32 %v204_v35, 0.0  ;;  %v307_v45 = vshll.u32 %v798_v37, 16  ;;  %v310_v46 = vshrl.u32 %v798_v37, 16  ;;  %v256_v16 = vmax.f32 %v252_v44, 0.0  ;;  %142 = vst.msk [vmem:[%s1051_s21 + $0x14] sm:$0xf] %vm139_vm9, %v936_v5 }
  0x3b   : > { %v799_v47 = vpack.c.bf16 %v192_v38, %v192_v38  ;;  %v336_v49 = vshll.u32 %v801_v41, 16  ;;  %v340_v50 = vshrl.u32 %v801_v41, 16  ;;  %v800_v51 = vpack.c.bf16 %v193_v42, %v193_v42  ;;  %152 = vst.msk [vmem:[%s1051_s21 + $0x50] sm:$0xf] %vm139_vm9, %v936_v5  ;;  %144 = vst.msk [vmem:[%s1051_s21 + $0x20] sm:$0xf] %vm139_vm9, %v936_v5 }
  0x3c   : > { %v309_v53 = vrot.slane %v307_v45, 5  ;;  %v312_v54 = vrot.slane %v310_v46, 4  ;;  %v224_v60 = vmax.f32 %v220_v48, 0.0  ;;  %v203_v26 = vmul.f32 0.5, %v198_v28  ;;  %146 = vst.msk [vmem:[%s1051_s21 + $0x2c] sm:$0xf] %vm139_vm9, %v936_v5 }
  0x3d   : > { %v316_v55 = vshll.u32 %v799_v47, 16  ;;  %v320_v56 = vshrl.u32 %v799_v47, 16  ;;  %v338_v57 = vrot.slane %v336_v49, 5  ;;  %v342_v58 = vrot.slane %v340_v50, 4  ;;  %148 = vst.msk [vmem:[%s1051_s21 + $0x38] sm:$0xf] %vm139_vm9, %v936_v5 }
  0x3e   : > { %v326_v59 = vshll.u32 %v800_v51, 16  ;;  %345 = vrot.lane.b32.xlu0 %v309_v53, %s937_s10  ;;  %v313_v61 = vor.u32 %v312_v54, %v309_v53  ;;  %v330_v0 = vshrl.u32 %v800_v51, 16  ;;  %v268_v3 = vsub.f32 %v224_v60, %v208_v43  ;;  %150 = vst.msk [vmem:[%s1051_s21 + $0x44] sm:$0xf] %vm139_vm9, %v936_v5 }
  0x3f   : > { %v318_v62 = vrot.slane %v316_v55, 5  ;;  %v322_v63 = vrot.slane %v320_v56, 4  ;;  %v343_v1 = vor.u32 %v342_v58, %v338_v57  ;;  %v260_v4 = vsub.f32 %v208_v43, %v224_v60  ;;  %v372_v18 = vld [vmem:[%s1051_s21 + $0x3c] sm:$0xf] }
  0x40   : > { %v328_v2 = vrot.slane %v326_v59, 5  ;;  %v314_v6 = vrot.slane %v313_v61, 4  ;;  %v332_v11 = vrot.slane %v330_v0, 4  ;;  %v272_v19 = vmax.f32 %v268_v3, 0.0 }
  0x41   : > { %v323_v7 = vor.u32 %v322_v63, %v318_v62  ;;  %v344_v17 = vrot.slane %v343_v1, 4  ;;  %v264_v24 = vmax.f32 %v260_v4, 0.0  ;;  %v276_v31 = vsub.f32 %v236_v52, %v256_v16 }
  0x42   : > { %v319_v29 = vsel %vm1139_vm8, %v314_v6, %v318_v62  ;;  %v333_v30 = vor.u32 %v332_v11, %v328_v2  ;;  %v806_v32 = vpack.c.bf16 %v272_v19, %v272_v19  ;;  %v207_v34 = vsub.f32 %v1079_v8, %v203_v26 }
  0x43   : > { %v324_v27 = vrot.slane %v323_v7, 4  ;;  %353 = vrot.lane.b32.xlu0 %v344_v17, %s937_s10  ;;  %v802_v33 = vpack.c.bf16 %v264_v24, %v264_v24  ;;  %v219_v35 = vmul.f32 0.5, %v215_v36  ;;  %v280_v39 = vmax.f32 %v276_v31, 0.0 }
  0x44   : > { %v334_v38 = vrot.slane %v333_v30, 4  ;;  %v284_v40 = vsub.f32 %v256_v16, %v236_v52  ;;  %v468_v28 = vshll.u32 %v806_v32, 16  ;;  %v211_v43 = vmax.f32 %v207_v34, 0.0 }
  0x45   : > { %v329_v37 = vsel %vm1139_vm8, %v324_v27, %v328_v2  ;;  %v388_v41 = vshll.u32 %v802_v33, 16  ;;  %v1150_v42 = vpack.c.bf16 %v280_v39, %v280_v39  ;;  %v223_v44 = vsub.f32 %v1082_v9, %v219_v35 }
  0x46   : > { %349 = vrot.lane.b32.xlu1 %v329_v37, %s937_s10  ;;  %v1154_v45 = vrot.slane %v468_v28, 5  ;;  %v471_v36 = vshrl.u32 %v806_v32, 16  ;;  %v339_v46 = vsel %vm1139_vm8, %v334_v38, %v338_v57  ;;  %v288_v49 = vmax.f32 %v284_v40, 0.0 }
  0x47   : > { %347 = vrot.lane.b32.xlu0 %v319_v29, %s937_s10  ;;  %v548_v47 = vshll.u32 %v1150_v42, 16  ;;  %v227_v48 = vmax.f32 %v223_v44, 0.0  ;;  %v1161_v50 = vrot.slane %v388_v41, 5  ;;  %v196_v51 = vadd.f32 %v1105_v21, %v1099_v15 }
  0x48   : > { %v213_v52 = vsub.f32 %v1093_v13, %v1105_v21  ;;  %v243_v53 = vsub.f32 %v1079_v8, %v1082_v9  ;;  %v1170_v54 = vmul.f32 0.5, %v1090_v12  ;;  %v391_v55 = vshrl.u32 %v802_v33, 16 }
  0x49   : > { %v271_v56 = vsub.f32 %v227_v48, %v211_v43  ;;  %v1172_v57 = vpack.c.bf16 %v288_v49, %v288_v49  ;;  %v1175_v58 = vrot.slane %v548_v47, 5  ;;  %v201_v59 = vmul.f32 0.5, %v196_v51 }
  0x4a   : > { %506 = vrot.lane.b32.xlu1 %v1154_v45, %s938_s22  ;;  %v217_v60 = vmul.f32 0.5, %v213_v52  ;;  %v263_v61 = vsub.f32 %v211_v43, %v227_v48  ;;  %v1178_v62 = vmul.f32 0.5, %v1118_v25  ;;  %v473_v63 = vrot.slane %v471_v36, 4 }
  0x4b   : > { %351 = vrot.lane.b32.xlu0 %v339_v46, %s937_s10  ;;  %v275_v0 = vmax.f32 %v271_v56, 0.0  ;;  %v628_v8 = vshll.u32 %v1172_v57, 16  ;;  %v205_v9 = vsub.f32 %v1093_v13, %v201_v59  ;;  %v197_v2 = vadd.f32 %v1108_v22, %v1102_v20 }
  0x4c   : > { %v221_v12 = vsub.f32 %v1099_v15, %v217_v60  ;;  %v267_v1 = vmax.f32 %v263_v61, 0.0  ;;  %v1187_v3 = vrot.slane %v391_v55, 4  ;;  %v214_v6 = vsub.f32 %v1096_v14, %v1108_v22 }
  0x4d   : > { %v809_v25 = vpack.c.bf16 %v275_v0, %v275_v0  ;;  %v1189_v4 = vrot.slane %v628_v8, 5  ;;  %v209_v7 = vmax.f32 %v205_v9, 0.0  ;;  %v202_v17 = vmul.f32 0.5, %v197_v2 }
  0x4e   : > { %426 = vrot.lane.b32.xlu1 %v1161_v50, %s939_s23  ;;  %v225_v11 = vmax.f32 %v221_v12, 0.0  ;;  %v805_v16 = vpack.c.bf16 %v267_v1, %v267_v1  ;;  %v474_v19 = vor.u32 %v473_v63, %v1154_v45  ;;  %v218_v27 = vmul.f32 0.5, %v214_v6 }
  0x4f   : > { %586 = vrot.lane.b32.xlu0 %v1175_v58, %s940_s24  ;;  %v497_v24 = vshll.u32 %v809_v25, 16  ;;  %v501_v26 = vshrl.u32 %v809_v25, 16  ;;  %v206_v32 = vsub.f32 %v1096_v14, %v202_v17  ;;  %v551_v41 = vshrl.u32 %v1150_v42, 16 }
  0x50   : > { %v269_v29 = vsub.f32 %v225_v11, %v209_v7  ;;  %v417_v30 = vshll.u32 %v805_v16, 16  ;;  %v421_v31 = vshrl.u32 %v805_v16, 16  ;;  %v222_v35 = vsub.f32 %v1102_v20, %v218_v27 }
  0x51   : > { %v1197_v33 = vrot.slane %v497_v24, 5  ;;  %v503_v34 = vrot.slane %v501_v26, 4  ;;  %v261_v37 = vsub.f32 %v209_v7, %v225_v11  ;;  %v210_v28 = vmax.f32 %v206_v32, 0.0 }
  0x52   : > { %v273_v38 = vmax.f32 %v269_v29, 0.0  ;;  %v1202_v39 = vrot.slane %v417_v30, 5  ;;  %v423_v40 = vrot.slane %v421_v31, 4  ;;  %v226_v44 = vmax.f32 %v222_v35, 0.0 }
  0x53   : > { %666 = vrot.lane.b32.xlu0 %v1189_v4, %s941_s25  ;;  %v504_v43 = vor.u32 %v503_v34, %v1197_v33  ;;  %v265_v45 = vmax.f32 %v261_v37, 0.0  ;;  %v475_v46 = vrot.slane %v474_v19, 4  ;;  %v247_v48 = vmul.f32 0.5, %v243_v53 }
  0x54   : > { %v807_v36 = vpack.c.bf16 %v273_v38, %v273_v38  ;;  %v424_v47 = vor.u32 %v423_v40, %v1202_v39  ;;  %v270_v51 = vsub.f32 %v226_v44, %v210_v28  ;;  %v262_v52 = vsub.f32 %v210_v28, %v226_v44 }
  0x55   : > { %v505_v49 = vrot.slane %v504_v43, 4  ;;  %v803_v55 = vpack.c.bf16 %v265_v45, %v265_v45  ;;  %v235_v61 = vsub.f32 %v1085_v10, %v1170_v54  ;;  %v394_v9 = vor.u32 %v1187_v3, %v1161_v50 }
  0x56   : > { %v477_v56 = vshll.u32 %v807_v36, 16  ;;  %v425_v59 = vrot.slane %v424_v47, 4  ;;  %v481_v60 = vshrl.u32 %v807_v36, 16  ;;  %v274_v42 = vmax.f32 %v270_v51, 0.0 }
  0x57   : > { %514 = vrot.lane.b32.xlu1 %v505_v49, %s938_s22  ;;  %v266_v63 = vmax.f32 %v262_v52, 0.0  ;;  %v397_v0 = vshll.u32 %v803_v55, 16  ;;  %v401_v8 = vshrl.u32 %v803_v55, 16  ;;  %v251_v1 = vsub.f32 %v1170_v54, %v247_v48 }
  0x58   : > { %v479_v53 = vrot.slane %v477_v56, 5  ;;  %434 = vrot.lane.b32.xlu0 %v425_v59, %s939_s23  ;;  %v483_v12 = vrot.slane %v481_v60, 4  ;;  %v808_v2 = vpack.c.bf16 %v274_v42, %v274_v42  ;;  %v239_v17 = vmax.f32 %v235_v61, 0.0 }
  0x59   : > { %v804_v25 = vpack.c.bf16 %v266_v63, %v266_v63  ;;  %v399_v6 = vrot.slane %v397_v0, 5  ;;  %v403_v7 = vrot.slane %v401_v8, 4  ;;  %v255_v19 = vsub.f32 %v251_v1, %v1085_v10 }
  0x5a   : > { %v480_v11 = vsel %vm1139_vm8, %v475_v46, %v479_v53  ;;  %v484_v16 = vor.u32 %v483_v12, %v479_v53  ;;  %v487_v50 = vshll.u32 %v808_v2, 16  ;;  %v491_v3 = vshrl.u32 %v808_v2, 16 }
  0x5b   : > { %508 = vrot.lane.b32.xlu1 %v480_v11, %s938_s22  ;;  %v407_v24 = vshll.u32 %v804_v25, 16  ;;  %v229_v26 = vmul.f32 0.5, %v1112_v23  ;;  %v259_v54 = vmax.f32 %v255_v19, 0.0  ;;  %v395_v29 = vrot.slane %v394_v9, 4 }
  0x5c   : > { %v485_v27 = vrot.slane %v484_v16, 4  ;;  %v411_v30 = vshrl.u32 %v804_v25, 16  ;;  %v489_v31 = vrot.slane %v487_v50, 5  ;;  %v493_v32 = vrot.slane %v491_v3, 4 }
  0x5d   : > { %v404_v34 = vor.u32 %v403_v7, %v399_v6  ;;  %v233_v35 = vsub.f32 %v1105_v21, %v229_v26  ;;  %v409_v37 = vrot.slane %v407_v24, 5  ;;  %v279_v38 = vsub.f32 %v239_v17, %v259_v54  ;;  %v165_v24 = vld [vmem:[%s1051_s21 + $0x5c] sm:$0xf] }
  0x5e   : > { %v287_v40 = vsub.f32 %v259_v54, %v239_v17  ;;  %v413_v10 = vrot.slane %v411_v30, 4  ;;  %v1220_v28 = vrot.slane %v551_v41, 4  ;;  %v494_v43 = vor.u32 %v493_v32, %v489_v31 }
  0x5f   : > { %v490_v44 = vsel %vm1139_vm8, %v485_v27, %v489_v31  ;;  %v241_v23 = vsub.f32 %v1093_v13, %v1099_v15  ;;  %v283_v45 = vmax.f32 %v279_v38, 0.0  ;;  %v400_v36 = vsel %vm1139_vm8, %v395_v29, %v399_v6 }
  0x60   : > { %510 = vrot.lane.b32.xlu0 %v490_v44, %s938_s22  ;;  %v291_v46 = vmax.f32 %v287_v40, 0.0  ;;  %v414_v47 = vor.u32 %v413_v10, %v409_v37  ;;  %v495_v48 = vrot.slane %v494_v43, 4  ;;  %v405_v49 = vrot.slane %v404_v34, 4 }
  0x61   : > { %v245_v51 = vmul.f32 0.5, %v241_v23  ;;  %v242_v41 = vsub.f32 %v1096_v14, %v1102_v20  ;;  %v813_v52 = vpack.c.bf16 %v283_v45, %v283_v45  ;;  %v237_v59 = vmax.f32 %v233_v35, 0.0 }
  0x62   : > { %v817_v55 = vpack.c.bf16 %v291_v46, %v291_v46  ;;  %v415_v56 = vrot.slane %v414_v47, 4  ;;  %v500_v13 = vsel %vm1139_vm8, %v495_v48, %v1197_v33  ;;  %v234_v60 = vsub.f32 %v1108_v22, %v1178_v62 }
  0x63   : > { %v249_v15 = vsub.f32 %v229_v26, %v245_v51  ;;  %v246_v61 = vmul.f32 0.5, %v242_v41  ;;  %512 = vrot.lane.b32.xlu1 %v500_v13, %s938_s22  ;;  %v577_v42 = vshll.u32 %v813_v52, 16  ;;  %v581_v63 = vshrl.u32 %v813_v52, 16 }
  0x64   : > { %428 = vrot.lane.b32.xlu0 %v400_v36, %s939_s23  ;;  %v657_v14 = vshll.u32 %v817_v55, 16  ;;  %v661_v20 = vshrl.u32 %v817_v55, 16  ;;  %v410_v0 = vsel %vm1139_vm8, %v405_v49, %v409_v37  ;;  %v420_v33 = vsel %vm1139_vm8, %v415_v56, %v1202_v39 }
  0x65   : > { %v253_v8 = vsub.f32 %v249_v15, %v1105_v21  ;;  %v250_v9 = vsub.f32 %v1178_v62, %v246_v61  ;;  %v1245_v53 = vrot.slane %v577_v42, 5  ;;  %v583_v12 = vrot.slane %v581_v63, 4 }
  0x66   : > { %v1247_v1 = vrot.slane %v657_v14, 5  ;;  %v663_v2 = vrot.slane %v661_v20, 4  ;;  %v238_v6 = vmax.f32 %v234_v60, 0.0  ;;  %v631_v39 = vshrl.u32 %v1172_v57, 16 }
  0x67   : > { %v257_v25 = vmax.f32 %v253_v8, 0.0  ;;  %v254_v7 = vsub.f32 %v250_v9, %v1108_v22  ;;  %430 = vrot.lane.b32.xlu1 %v410_v0, %s939_s23  ;;  %v584_v21 = vor.u32 %v583_v12, %v1245_v53  ;;  %v554_v22 = vor.u32 %v1220_v28, %v1175_v58  ;;  %v363_v9 = vld [vmem:[%s1051_s21 + $0xc] sm:$0x8] }
  0x68   : > { %v664_v62 = vor.u32 %v663_v2, %v1247_v1  ;;  %432 = vrot.lane.b32.xlu0 %v420_v33, %s939_s23  ;;  %v633_v26 = vrot.slane %v631_v39, 4  ;;  %v166_v34 = vsel %vm164_vm10, 0, %v165_v24  ;;  %vm361_vm12 = vsmask.f32 7950  ;;  %v532_v24 = vld [vmem:[%s1051_s21 + $0x40] sm:$0xf] }
  0x69   : > { %v277_v11 = vsub.f32 %v237_v59, %v257_v25  ;;  %v258_v16 = vmax.f32 %v254_v7, 0.0  ;;  %v285_v17 = vsub.f32 %v257_v25, %v237_v59  ;;  %v585_v19 = vrot.slane %v584_v21, 4  ;;  %167 = vst [vmem:[%s1051_s21 + $0x5c] sm:$0xf] %v166_v34  ;;  %vm362_vm13 = vmand %vm360_vm11, %vm361_vm12  ;;  %v523_v7 = vld [vmem:[%s1051_s21 + $0x10] sm:$0x8] }
  0x6a   : > { %v665_v27 = vrot.slane %v664_v62, 4  ;;  %v555_v32 = vrot.slane %v554_v22, 4  ;;  %v634_v40 = vor.u32 %v633_v26, %v1189_v4  ;;  %vm366_vm14 = vcmask 380024  }
  0x6b   : > { %v281_v57 = vmax.f32 %v277_v11, 0.0  ;;  %v278_v58 = vsub.f32 %v238_v6, %v258_v16  ;;  %v289_v50 = vmax.f32 %v285_v17, 0.0  ;;  %v286_v3 = vsub.f32 %v258_v16, %v238_v6  ;;  %594 = vrot.lane.b32.xlu1 %v585_v19, %s940_s24  ;;  %vm371_vm15 = vmand %vm366_vm14, %vm154_vm1  ;;  %v683_v19 = vld [vmem:[%s1051_s21 + $0x14] sm:$0x8] }
  0x6c   : > { %v635_v15 = vrot.slane %v634_v40, 4  ;;  %vm521_vm0 = vcmask 347227   ;;  %vm441_vm3 = vcmask 888427   ;;  %vm601_vm5 = vcmask 855627  }
  0x6d   : > { %v811_v54 = vpack.c.bf16 %v281_v57, %v281_v57  ;;  %v282_v29 = vmax.f32 %v278_v58, 0.0  ;;  %v815_v30 = vpack.c.bf16 %v289_v50, %v289_v50  ;;  %v290_v31 = vmax.f32 %v286_v3, 0.0  ;;  %vm522_vm2 = vmand %vm521_vm0, %vm361_vm12 }
  0x6e   : > { %vm442_vm4 = vmand %vm441_vm3, %vm361_vm12  ;;  %vm681_vm6 = vcmask 314427   ;;  %vm526_vm9 = vcmask 347224   ;;  %vm446_vm10 = vcmask 888424  }
  0x6f   : > { %v557_v5 = vshll.u32 %v811_v54, 16  ;;  %v812_v35 = vpack.c.bf16 %v282_v29, %v282_v29  ;;  %v561_v37 = vshrl.u32 %v811_v54, 16  ;;  %v637_v38 = vshll.u32 %v815_v30, 16  ;;  %674 = vrot.lane.b32.xlu1 %v665_v27, %s941_s25  ;;  %vm602_vm7 = vmand %vm601_vm5, %vm361_vm12 }
  0x70   : > { %v816_v10 = vpack.c.bf16 %v290_v31, %v290_v31  ;;  %v641_v28 = vshrl.u32 %v815_v30, 16  ;;  %vm531_vm11 = vmand %vm526_vm9, %vm154_vm1 }
  0x71   : > { %v559_v43 = vrot.slane %v557_v5, 5  ;;  %v563_v44 = vrot.slane %v561_v37, 4  ;;  %v567_v23 = vshll.u32 %v812_v35, 16  ;;  %v571_v45 = vshrl.u32 %v812_v35, 16 }
  0x72   : > { %v639_v36 = vrot.slane %v637_v38, 5  ;;  %v643_v46 = vrot.slane %v641_v28, 4  ;;  %v647_v47 = vshll.u32 %v816_v10, 16  ;;  %v651_v48 = vshrl.u32 %v816_v10, 16  ;;  %v692_v28 = vld [vmem:[%s1051_s21 + $0x44] sm:$0xf] }
  0x73   : > { %v560_v49 = vsel %vm1139_vm8, %v555_v32, %v559_v43  ;;  %v564_v51 = vor.u32 %v563_v44, %v559_v43  ;;  %v569_v41 = vrot.slane %v567_v23, 5  ;;  %v573_v52 = vrot.slane %v571_v45, 4 }
  0x74   : > { %588 = vrot.lane.b32.xlu1 %v560_v49, %s940_s24  ;;  %v644_v4 = vor.u32 %v643_v46, %v639_v36  ;;  %v649_v55 = vrot.slane %v647_v47, 5  ;;  %v653_v56 = vrot.slane %v651_v48, 4  ;;  %v640_v20 = vsel %vm1139_vm8, %v635_v15, %v639_v36 }
  0x75   : > { %v565_v59 = vrot.slane %v564_v51, 4  ;;  %v574_v13 = vor.u32 %v573_v52, %v569_v41 }
  0x76   : > { %v654_v60 = vor.u32 %v653_v56, %v649_v55  ;;  %v645_v63 = vrot.slane %v644_v4, 4 }
  0x77   : > { %v570_v61 = vsel %vm1139_vm8, %v565_v59, %v569_v41  ;;  %v575_v42 = vrot.slane %v574_v13, 4 }
  0x78   : > { %590 = vrot.lane.b32.xlu0 %v570_v61, %s940_s24  ;;  %v655_v0 = vrot.slane %v654_v60, 4  ;;  %v650_v33 = vsel %vm1139_vm8, %v645_v63, %v649_v55 }
  0x79   : > { %v580_v14 = vsel %vm1139_vm8, %v575_v42, %v1245_v53 }
  0x7a   : > { %592 = vrot.lane.b32.xlu1 %v580_v14, %s940_s24  ;;  %v660_v8 = vsel %vm1139_vm8, %v655_v0, %v1247_v1  ;;  %vm682_vm8 = vmand %vm681_vm6, %vm361_vm12 }
  0x7b   : > { %vm451_vm12 = vmand %vm446_vm10, %vm154_vm1 }
  0x7c   : > { %668 = vrot.lane.b32.xlu0 %v640_v20, %s941_s25 }
  0x7e   : > { %670 = vrot.lane.b32.xlu1 %v650_v33, %s941_s25 }
  0x80   : > { %672 = vrot.lane.b32.xlu0 %v660_v8, %s941_s25 }
  0xb0   : > { %v346_v53 = vpop.permute.xlu0 %345 }
  0xb1   : > { %v364_v12 = vsel %vm362_vm13, %v346_v53, %v363_v9  ;;  %vm606_vm13 = vcmask 855624  }
  0xb2   : > { %365 = vst [vmem:[%s1051_s21 + $0xc] sm:$0x8] %v364_v12 }
  0xb5   : > { %v354_v1 = vpop.permute.xlu0 %353 }
  0xb6   : > { %v373_v2 = vsel %vm371_vm15, %v354_v1, %v372_v18  ;;  %vm686_vm15 = vcmask 314424  }
  0xb7   : > { %374 = vst [vmem:[%s1051_s21 + $0x3c] sm:$0xf] %v373_v2  ;;  %vm691_vm0 = vmand %vm686_vm15, %vm154_vm1 }
  0xb8   : > { %v350_v25 = vpop.permute.xlu1 %349 }
  0xb9   : > { %368 = vst.msk [vmem:[%s1051_s21 + $0x24] sm:$0xf] %vm366_vm14, %v350_v25  ;;  %v348_v6 = vpop.permute.xlu0 %347  ;;  %v443_v16 = vld [vmem:[%s1051_s21 + $0xc] sm:$0x8] }
  0xba   : > { %367 = vst.msk [vmem:[%s1051_s21 + $0x18] sm:$0xf] %vm366_vm14, %v348_v6 }
  0xbc   : > { %v507_v39 = vpop.permute.xlu1 %506 }
  0xbd   : > { %v524_v21 = vsel %vm522_vm2, %v507_v39, %v523_v7  ;;  %v352_v62 = vpop.permute.xlu0 %351 }
  0xbe   : > { %525 = vst [vmem:[%s1051_s21 + $0x10] sm:$0x8] %v524_v21  ;;  %369 = vst.msk [vmem:[%s1051_s21 + $0x30] sm:$0xf] %vm366_vm14, %v352_v62  ;;  %v452_v29 = vld [vmem:[%s1051_s21 + $0x3c] sm:$0xf] }
  0xbf   : > { %vm611_vm14 = vmand %vm606_vm13, %vm154_vm1 }
  0xc0   : > { %v427_v11 = vpop.permute.xlu1 %426 }
  0xc1   : > { %v444_v17 = vsel %vm442_vm4, %v427_v11, %v443_v16  ;;  %v587_v22 = vpop.permute.xlu0 %586 }
  0xc2   : > { %445 = vst [vmem:[%s1051_s21 + $0xc] sm:$0x8] %v444_v17 }
  0xc5   : > { %v603_v57 = vld [vmem:[%s1051_s21 + $0x10] sm:$0x8]  ;;  %v667_v50 = vpop.permute.xlu0 %666 }
  0xc6   : > { %v604_v58 = vsel %vm602_vm7, %v587_v22, %v603_v57  ;;  %v684_v3 = vsel %vm682_vm8, %v667_v50, %v683_v19 }
  0xc7   : > { %605 = vst [vmem:[%s1051_s21 + $0x10] sm:$0x8] %v604_v58  ;;  %685 = vst [vmem:[%s1051_s21 + $0x14] sm:$0x8] %v684_v3 }
  0xc9   : > { %v515_v26 = vpop.permute.xlu1 %514 }
  0xca   : > { %v533_v27 = vsel %vm531_vm11, %v515_v26, %v532_v24  ;;  %v435_v54 = vpop.permute.xlu0 %434 }
  0xcb   : > { %534 = vst [vmem:[%s1051_s21 + $0x40] sm:$0xf] %v533_v27  ;;  %v453_v30 = vsel %vm451_vm12, %v435_v54, %v452_v29 }
  0xcc   : > { %454 = vst [vmem:[%s1051_s21 + $0x3c] sm:$0xf] %v453_v30 }
  0xcd   : > { %v509_v31 = vpop.permute.xlu1 %508 }
  0xce   : > { %527 = vst.msk [vmem:[%s1051_s21 + $0x1c] sm:$0xf] %vm526_vm9, %v509_v31 }
  0xd2   : > { %v511_v32 = vpop.permute.xlu0 %510  ;;  %v612_v40 = vld [vmem:[%s1051_s21 + $0x40] sm:$0xf] }
  0xd3   : > { %528 = vst.msk [vmem:[%s1051_s21 + $0x28] sm:$0xf] %vm526_vm9, %v511_v32 }
  0xd5   : > { %v513_v34 = vpop.permute.xlu1 %512 }
  0xd6   : > { %v429_v5 = vpop.permute.xlu0 %428  ;;  %529 = vst.msk [vmem:[%s1051_s21 + $0x34] sm:$0xf] %vm526_vm9, %v513_v34 }
  0xd7   : > { %447 = vst.msk [vmem:[%s1051_s21 + $0x18] sm:$0xf] %vm446_vm10, %v429_v5 }
  0xd9   : > { %v431_v35 = vpop.permute.xlu1 %430 }
  0xda   : > { %v433_v37 = vpop.permute.xlu0 %432  ;;  %448 = vst.msk [vmem:[%s1051_s21 + $0x24] sm:$0xf] %vm446_vm10, %v431_v35 }
  0xdb   : > { %449 = vst.msk [vmem:[%s1051_s21 + $0x30] sm:$0xf] %vm446_vm10, %v433_v37 }
  0xdd   : > { %v595_v38 = vpop.permute.xlu1 %594 }
  0xde   : > { %v613_v10 = vsel %vm611_vm14, %v595_v38, %v612_v40 }
  0xdf   : > { %614 = vst [vmem:[%s1051_s21 + $0x40] sm:$0xf] %v613_v10 }
  0xe1   : > { %v675_v43 = vpop.permute.xlu1 %674 }
  0xe2   : > { %v693_v44 = vsel %vm691_vm0, %v675_v43, %v692_v28 }
  0xe3   : > { %694 = vst [vmem:[%s1051_s21 + $0x44] sm:$0xf] %v693_v44 }
  0xe6   : > { %v589_v23 = vpop.permute.xlu1 %588 }
  0xe7   : > { %607 = vst.msk [vmem:[%s1051_s21 + $0x1c] sm:$0xf] %vm606_vm13, %v589_v23 }
  0xea   : > { %v591_v45 = vpop.permute.xlu0 %590 }
  0xeb   : > { %608 = vst.msk [vmem:[%s1051_s21 + $0x28] sm:$0xf] %vm606_vm13, %v591_v45 }
  0xec   : > { %v593_v36 = vpop.permute.xlu1 %592 }
  0xed   : > { %609 = vst.msk [vmem:[%s1051_s21 + $0x34] sm:$0xf] %vm606_vm13, %v593_v36 }
  0xee   : > { %v669_v46 = vpop.permute.xlu0 %668 }
  0xef   : > { %687 = vst.msk [vmem:[%s1051_s21 + $0x20] sm:$0xf] %vm686_vm15, %v669_v46 }
  0xf0   : > { %v671_v47 = vpop.permute.xlu1 %670 }
  0xf1   : > { %688 = vst.msk [vmem:[%s1051_s21 + $0x2c] sm:$0xf] %vm686_vm15, %v671_v47 }
  0xf2   : > { %v673_v48 = vpop.permute.xlu0 %672 }
  0xf3   : > { %689 = vst.msk [vmem:[%s1051_s21 + $0x38] sm:$0xf] %vm686_vm15, %v673_v48 }
  0xf4 PF: > { %p11_p9 = scmp.ge.s32.totalorder %s974_s11, 4   ;;  %s1396_s6 = smov %s923_s7 }
  0xf5   : > { %s1397_s7 = smov %s927_s8  ;;  %s1398_s8 = smov %s984_s14 }
  0xf6   : > { %s1399_s9 = smov %s974_s11  ;;  %13 = sbr.rel (!%p11_p9) target bundleno = 3 (0x3), region = 66 }
  0xfb   :  { %716 = vsyncpa [#allocation3], 1 }
  0xfc   :  { %718 = vsyncpa [#allocation3 + $0x1], 1 }

</bundles_post_ra>
